<compile_context>
chip_gen: v6e
topology: v6e:2x2x1
jax: 0.10.0
libtpu: 0.0.40
codegen_flags: <defaults>
</compile_context>

<pallas_src>
import math
from functools import partial

import jax
import jax.numpy as jnp
from jax import lax
from jax.experimental import pallas as pl
from jax.experimental.pallas import tpu as pltpu


# ------------------------------ tile selection -------------------------------

def _pick_tile(dim, target, multiple):
    """Largest divisor of `dim` that is <= target and a multiple of `multiple`;
    falls back to the full extent (always layout-legal) if none exists."""
    if dim <= target:
        return dim
    start = target - (target % multiple)
    for cand in range(start, 0, -multiple):
        if dim % cand == 0:
            return cand
    # TODO(synk): pad M/K/N when no multiple-of-8/128 divisor <= target exists;
    # full-extent blocks are legal but can blow past scoped VMEM at prod scale.
    return dim


def _vmem_capacity_bytes():
    try:
        info = pltpu.get_tpu_info()
        cap = getattr(info, "vmem_capacity_bytes", None)
        if cap:
            return int(cap)
    except Exception:
        pass
    return 64 << 20  # conservative default (v7x per-TC VMEM)


def _default_adapter_tm():
    # v5e/v6e (128 MiB VMEM): tm=1024; v7x (64 MiB): tm=512.
    return 1024 if _vmem_capacity_bytes() >= (96 << 20) else 512


# ----------------------------- tiled linear GEMM -----------------------------

def _linear_kernel(x_ref, wt_ref, o_ref, acc_ref):
    # y = x @ W_t with fp32 accumulation across the K grid axis.
    @pl.when(pl.program_id(2) == 0)
    def _():
        acc_ref[...] = jnp.zeros_like(acc_ref)

    acc_ref[...] += jnp.dot(x_ref[...], wt_ref[...],
                            preferred_element_type=jnp.float32)

    @pl.when(pl.program_id(2) == pl.num_programs(2) - 1)
    def _():
        o_ref[...] = acc_ref[...].astype(o_ref.dtype)


def linear_pallas(x2d, w_t, *, tm=256, tn=512, tk=4096):
    M, K = x2d.shape
    K2, N = w_t.shape
    assert K == K2
    tm = _pick_tile(M, tm, 8)
    tn = _pick_tile(N, tn, 128)
    tk = _pick_tile(K, tk, 128)

    itemsize = jnp.dtype(x2d.dtype).itemsize
    est = (2 * tm * tk * itemsize          # x tile, double-buffered
           + 2 * tk * tn * itemsize        # weight tile, double-buffered
           + 2 * tm * tn * itemsize        # out tile, double-buffered
           + tm * tn * 4)                  # fp32 accumulator
    vmem_limit = min(int(est * 1.5), 64 << 20) if est > (12 << 20) else None

    return pl.pallas_call(
        _linear_kernel,
        out_shape=jax.ShapeDtypeStruct((M, N), x2d.dtype),
        grid=(M // tm, N // tn, K // tk),
        in_specs=[
            pl.BlockSpec((tm, tk), lambda i, j, k: (i, k)),
            pl.BlockSpec((tk, tn), lambda i, j, k: (k, j)),
        ],
        out_specs=pl.BlockSpec((tm, tn), lambda i, j, k: (i, j)),
        scratch_shapes=[pltpu.VMEM((tm, tn), jnp.float32)],
        compiler_params=pltpu.CompilerParams(
            dimension_semantics=("parallel", "parallel", "arbitrary"),
            vmem_limit_bytes=vmem_limit),
    )(x2d, w_t)


# ----------- fused adapter attention + o_proj + residual (head groups) -------

def _adapter_kernel(q_ref, kT_ref, v_ref, wo_ref, base_ref, o_ref, acc_ref):
    # q_ref:   (hb, tm, Dh)     queries of this head group
    # kT_ref:  (hb, Dh, L)      adapter keys^T (1/sqrt(Dh) pre-folded)
    # v_ref:   (hb, L, Dh)      adapter values (adaption gate pre-folded)
    # wo_ref:  (1, hb*Dh, D)    this head group's slice of Wo^T
    # base_ref:(tm, D)          base-attention output (residual)
    # o_ref:   (tm, D)          final output (aliased onto the base buffer)
    # acc_ref: (tm, D) fp32     resident accumulator across the head-group axis
    g = pl.program_id(1)

    @pl.when(g == 0)
    def _():
        acc_ref[...] = base_ref[...].astype(jnp.float32)

    hb = q_ref.shape[0]
    ctxs = []
    for h in range(hb):                            # hb is 1 or 2: static unroll
        q = q_ref[h]                               # (tm, Dh)
        kT = kT_ref[h]                             # (Dh, L)
        v = v_ref[h]                               # (L, Dh)
        s = jnp.dot(q, kT, preferred_element_type=jnp.float32)      # (tm, L)
        s = s - jnp.max(s, axis=-1, keepdims=True)
        e = jnp.exp(s)
        p = e * pl.reciprocal(jnp.sum(e, axis=-1, keepdims=True), approx=True)
        ctxs.append(jnp.dot(p.astype(v.dtype), v,
                            preferred_element_type=jnp.float32))    # (tm, Dh)

    # sum_h ctx_h @ Wo_h == concat_h(ctx_h) @ concat_h(Wo_h): one MXU matmul with
    # a hb*Dh-deep contraction (fills the 256-deep MXU on v6e/v7x when hb=2).
    ctx = ctxs[0] if hb == 1 else jnp.concatenate(ctxs, axis=-1)     # (tm, hb*Dh)
    acc_ref[...] += jnp.dot(ctx.astype(wo_ref.dtype), wo_ref[0],
                            preferred_element_type=jnp.float32)      # (tm, D)

    @pl.when(g == pl.num_programs(1) - 1)
    def _():
        o_ref[...] = acc_ref[...].astype(o_ref.dtype)


def adapter_attention_oproj_pallas(q_hmd, adapter_kT, adapter_v, wo_heads,
                                   base2d, *, tm=None):
    # q_hmd: (H, M, Dh); adapter_kT: (H, Dh, L); adapter_v: (H, L, Dh);
    # wo_heads: (H, Dh, D); base2d: (M, D) residual (updated in place).
    H, M, Dh = q_hmd.shape
    L = adapter_v.shape[1]
    D = base2d.shape[1]
    hb = 2 if H % 2 == 0 else 1                    # heads per grid step

    if tm is None:
        tm = _default_adapter_tm()
    tm = _pick_tile(M, tm, 8)
    # keep >= 2 M-blocks when M is big enough so v7x's second TensorCore gets work
    if tm == M and M > 256:
        tm = _pick_tile(M, M // 2, 8)

    wo_grp = wo_heads.reshape(H // hb, hb * Dh, D)  # contiguous: free reshape

    cdt_sz = jnp.dtype(q_hmd.dtype).itemsize
    base_sz = jnp.dtype(base2d.dtype).itemsize
    est = (tm * D * 4                               # fp32 accumulator
           + 2 * tm * D * base_sz                   # base in, double-buffered
           + 2 * tm * D * base_sz                   # out, double-buffered
           + 2 * hb * Dh * D * cdt_sz               # Wo slice, double-buffered
           + 2 * hb * tm * Dh * cdt_sz              # q tile, double-buffered
           + 4 * hb * L * Dh * cdt_sz)              # kT + v, double-buffered
    vmem_limit = None
    if est > (28 << 20):
        cap = _vmem_capacity_bytes()
        vmem_limit = min(int(est * 1.4) + (4 << 20), cap - (8 << 20))

    return pl.pallas_call(
        _adapter_kernel,
        out_shape=jax.ShapeDtypeStruct((M, D), base2d.dtype),
        grid=(M // tm, H // hb),                    # head groups = reduction axis
        in_specs=[
            pl.BlockSpec((hb, tm, Dh), lambda m, g: (g, m, 0)),
            pl.BlockSpec((hb, Dh, L), lambda m, g: (g, 0, 0)),
            pl.BlockSpec((hb, L, Dh), lambda m, g: (g, 0, 0)),
            pl.BlockSpec((1, hb * Dh, D), lambda m, g: (g, 0, 0)),
            pl.BlockSpec((tm, D), lambda m, g: (m, 0)),
        ],
        out_specs=pl.BlockSpec((tm, D), lambda m, g: (m, 0)),
        scratch_shapes=[pltpu.VMEM((tm, D), jnp.float32)],
        input_output_aliases={4: 0},                # residual buffer reused in place
        compiler_params=pltpu.CompilerParams(
            dimension_semantics=("parallel", "arbitrary"),
            vmem_limit_bytes=vmem_limit),
    )(q_hmd, adapter_kT, adapter_v, wo_grp, base2d)


# ------------------------- plain-JAX glue (rotary, base attn) ----------------

def rotate_half(x):
    d = x.shape[-1]
    x1 = x[..., : d // 2]
    x2 = x[..., d // 2:]
    return jnp.concatenate((-x2, x1), axis=-1)


def make_rotary(seq_len, head_dim, dtype=jnp.float32):
    inv_freq = 1.0 / (
        10000.0 ** (jnp.arange(0, head_dim, 2, dtype=jnp.float32) / head_dim)
    )
    t = jnp.arange(seq_len, dtype=jnp.float32)
    freqs = jnp.einsum("i,j->ij", t, inv_freq)
    emb = jnp.concatenate((freqs, freqs), axis=-1)
    return (
        jnp.cos(emb)[None, None].astype(dtype),
        jnp.sin(emb)[None, None].astype(dtype),
    )


def apply_rotary(q, cos, sin, position_ids):
    cos_g = cos[0, 0][position_ids][:, None, :, :]   # (B, 1, S, Dh)
    sin_g = sin[0, 0][position_ids][:, None, :, :]
    return q * cos_g + rotate_half(q) * sin_g


def base_llama_attention(params, hidden_states, position_ids, *, num_heads, head_dim):
    """Wrapped LlamaAttention: self.model(**kwargs). Plain-JAX glue.
    Also returns the post-rotary query states so the adapter path can reuse
    them (llama_compute_query_states recomputes exactly the same tensor)."""
    B, S, D = hidden_states.shape
    H, Dh = num_heads, head_dim

    q = (hidden_states @ params["Wq"].T).reshape(B, S, H, Dh).transpose(0, 2, 1, 3)
    k = (hidden_states @ params["Wk"].T).reshape(B, S, H, Dh).transpose(0, 2, 1, 3)
    v = (hidden_states @ params["Wv"].T).reshape(B, S, H, Dh).transpose(0, 2, 1, 3)

    cos, sin = make_rotary(S, Dh)
    q = apply_rotary(q, cos, sin, position_ids)
    k = apply_rotary(k, cos, sin, position_ids)

    scores = jnp.einsum("bhqd,bhkd->bhqk", q, k) / math.sqrt(Dh)
    causal = jnp.tril(jnp.ones((S, S), dtype=bool))
    scores = jnp.where(causal, scores, jnp.finfo(jnp.float32).min)
    probs = jax.nn.softmax(scores.astype(jnp.float32), axis=-1).astype(q.dtype)
    attn = jnp.einsum("bhqk,bhkd->bhqd", probs, v)
    attn = attn.transpose(0, 2, 1, 3).reshape(B, S, D)
    out = attn @ params["Wo"].T
    past_key_value = (k, v)
    return out, None, past_key_value, q


# ------------------- one-time weight preprocessing (outside jit) -------------

def prepare_adapted_attention_params(params, *, num_heads, head_dim,
                                     compute_dtype=jnp.bfloat16):
    """Per-call weight transpose/concat/cast hoisted out of the forward pass:
    done once here, reused by every adapted_attention_forward call."""
    D = params["Wq"].shape[0]
    H, Dh = num_heads, head_dim
    prepared = dict(params)
    # fused [Wk^T | Wv^T] for the adapter-prompt K/V projection
    prepared["wkv_t"] = jnp.concatenate(
        [params["Wk"].T, params["Wv"].T], axis=1).astype(compute_dtype)   # (D, 2D)
    # per-head slices of Wo^T for the fused adapter o_proj
    prepared["wo_heads"] = params["Wo"].T.reshape(H, Dh, D).astype(compute_dtype)
    # adaption prompt already in compute dtype
    prepared["prompt_cd"] = params["adaption_prompt"][0].astype(compute_dtype)  # (L, D)
    return prepared


# ----------------------- AdaptedAttention.forward -----------------------------

@partial(jax.jit,
         static_argnames=("num_heads", "head_dim", "adapter_len",
                          "compute_dtype", "adapter_tm"))
def adapted_attention_forward(params, hidden_states, position_ids, *,
                              num_heads, head_dim, adapter_len,
                              compute_dtype=jnp.bfloat16, adapter_tm=None):
    H, Dh, L = num_heads, head_dim, adapter_len
    output, _, past_key_value, q = base_llama_attention(
        params, hidden_states, position_ids, num_heads=H, head_dim=Dh)
    B, S, D = output.shape
    M = B * S

    # adapter K/V projection of the adaption prompt: one fused GEMM
    # (weights were prepared once, outside this jitted forward).
    kv = linear_pallas(params["prompt_cd"], params["wkv_t"])              # (L, 2D)
    key, value = kv[:, :D], kv[:, D:]

    gate = params["adaption_gate"][0]
    scale = 1.0 / math.sqrt(Dh)
    # keys pre-transposed to (H, Dh, L) with 1/sqrt(Dh) folded in (tiny tensor);
    # gate folded into v (gate * softmax(s) @ v == softmax(s) @ (gate * v)).
    adapter_kT = (key.astype(jnp.float32) * scale).reshape(L, H, Dh)
    adapter_kT = adapter_kT.transpose(1, 2, 0).astype(compute_dtype)      # (H, Dh, L)
    adapter_v = (gate * value.astype(jnp.float32)).reshape(L, H, Dh)
    adapter_v = adapter_v.transpose(1, 0, 2).astype(compute_dtype)        # (H, L, Dh)

    # reuse the post-rotary q from base attention (llama_compute_query_states
    # recomputes exactly this tensor); no extra scaling pass over q.
    q_hmd = q.transpose(1, 0, 2, 3).reshape(H, M, Dh).astype(compute_dtype)

    out2d = adapter_attention_oproj_pallas(
        q_hmd, adapter_kT, adapter_v, params["wo_heads"],
        output.reshape(M, D), tm=adapter_tm)
    return out2d.reshape(B, S, D), None, past_key_value


# ----------------------------- pure-JAX reference -----------------------------

def adapted_attention_reference(params, hidden_states, position_ids, *,
                                num_heads, head_dim, adapter_len):
    output, _, past_key_value, _ = base_llama_attention(
        params, hidden_states, position_ids,
        num_heads=num_heads, head_dim=head_dim)
    B, S, D = output.shape
    H, Dh, L = num_heads, head_dim, adapter_len

    key = params["adaption_prompt"] @ params["Wk"].T          # (1, L, D)
    value = params["adaption_prompt"] @ params["Wv"].T
    adapter_k = jnp.broadcast_to(
        key.reshape(1, L, H, Dh), (B, L, H, Dh)).transpose(0, 2, 1, 3)
    adapter_v = jnp.broadcast_to(
        value.reshape(1, L, H, Dh), (B, L, H, Dh)).transpose(0, 2, 1, 3)

    q = (hidden_states @ params["Wq"].T).reshape(B, S, H, Dh).transpose(0, 2, 1, 3)
    cos, sin = make_rotary(S, Dh)
    q = apply_rotary(q, cos, sin, position_ids)

    scores = jnp.einsum("bhqd,bhkd->bhqk", q, adapter_k) / math.sqrt(Dh)
    scores = params["adaption_gate"][0] * jax.nn.softmax(
        scores.astype(jnp.float32), axis=-1).astype(q.dtype)
    adapter_out = jnp.einsum("bhqk,bhkd->bhqd", scores, adapter_v)
    adapter_out = adapter_out.transpose(0, 2, 1, 3).reshape(B, S, D)
    adapter_out = adapter_out @ params["Wo"].T
    return output + adapter_out, None, past_key_value


# --------------------------------- main ---------------------------------------

if __name__ == "__main__":
    B, S, D = 2, 8, 32          # batch, seq, hidden_size
    H, Dh = 4, 8                # num_heads, head_dim
    L = 8                       # adapter_len

    key = jax.random.PRNGKey(0)
    k_hs, k_p, k_q, k_k, k_v, k_o = jax.random.split(key, 6)

    params = {
        "Wq": 0.05 * jax.random.normal(k_q, (D, D), jnp.float32),
        "Wk": 0.05 * jax.random.normal(k_k, (D, D), jnp.float32),
        "Wv": 0.05 * jax.random.normal(k_v, (D, D), jnp.float32),
        "Wo": 0.05 * jax.random.normal(k_o, (D, D), jnp.float32),
        # module __init__: adaption_prompt ~ normal(), adaption_gate = zeros(1).
        # Gate set nonzero here so the adapter path actually exercises the kernels.
        "adaption_prompt": jax.random.normal(k_p, (1, L, D), jnp.float32),
        "adaption_gate": jnp.array([0.5], jnp.float32),
    }

    hidden_states = jax.random.normal(k_hs, (B, S, D), jnp.float32)
    position_ids = jnp.broadcast_to(jnp.arange(S, dtype=jnp.int32)[None, :], (B, S))

    prepared = prepare_adapted_attention_params(
        params, num_heads=H, head_dim=Dh, compute_dtype=jnp.bfloat16)

    out, _, pkv = adapted_attention_forward(
        prepared, hidden_states, position_ids,
        num_heads=H, head_dim=Dh, adapter_len=L, compute_dtype=jnp.bfloat16)
    out = jax.block_until_ready(out)

    ref_out, _, _ = adapted_attention_reference(
        params, hidden_states, position_ids,
        num_heads=H, head_dim=Dh, adapter_len=L)
    ref_out = jax.block_until_ready(ref_out)

    assert out.shape == (B, S, D)
    # bf16 GEMM operands (fp32 accumulation) in the adapter path -> looser tol.
    assert jnp.allclose(out, ref_out, rtol=1e-2, atol=1e-2), (
        float(jnp.max(jnp.abs(out - ref_out)))
    )
    print("KERNEL_OK")
</pallas_src>

<mosaic_0001>
module attributes {stable_mosaic.version = 11 : i64} {
  func.func @_linear_kernel(%arg0: i32, %arg1: i32, %arg2: i32, %arg3: memref<8x32xbf16, #tpu.memory_space<vmem>>, %arg4: memref<32x64xbf16, #tpu.memory_space<vmem>>, %arg5: memref<8x64xbf16, #tpu.memory_space<vmem>>, %arg6: memref<8x64xf32, #tpu.memory_space<vmem>>) attributes {dimension_semantics = [#tpu.dimension_semantics<parallel>, #tpu.dimension_semantics<parallel>, #tpu.dimension_semantics<arbitrary>], iteration_bounds = array<i64: 1, 1, 1>, scalar_prefetch = 0 : i64, scratch_operands = 1 : i64, tpu.core_type = #tpu.core_type<tc>, window_params = [{transform_indices = @transform_0, window_bounds = array<i64: 8, 32>}, {transform_indices = @transform_1, window_bounds = array<i64: 32, 64>}, {transform_indices = @transform_2, window_bounds = array<i64: 8, 64>}]} {
    %c0_i32 = arith.constant 0 : i32
    %0 = arith.cmpi eq, %arg2, %c0_i32 : i32
    %1 = arith.extui %0 : i1 to i32
    %c0_i32_0 = arith.constant 0 : i32
    %2 = arith.cmpi ne, %1, %c0_i32_0 : i32
    scf.if %2 {
      %cst_10 = arith.constant 0.000000e+00 : f32
      %12 = vector.broadcast %cst_10 : f32 to vector<8x64xf32>
      %c0_11 = arith.constant 0 : index
      %c0_12 = arith.constant 0 : index
      %13 = vector.load %arg6[%c0_11, %c0_12] : memref<8x64xf32, #tpu.memory_space<vmem>>, vector<8x64xf32>
      tpu.vector_store %arg6[%c0_11, %c0_12], %12 {strides = array<i32>} : memref<8x64xf32, #tpu.memory_space<vmem>>, vector<8x64xf32>,
    } else {
    }
    %c0 = arith.constant 0 : index
    %c0_1 = arith.constant 0 : index
    %3 = vector.load %arg6[%c0, %c0_1] : memref<8x64xf32, #tpu.memory_space<vmem>>, vector<8x64xf32>
    %c0_2 = arith.constant 0 : index
    %c0_3 = arith.constant 0 : index
    %4 = vector.load %arg3[%c0_2, %c0_3] : memref<8x32xbf16, #tpu.memory_space<vmem>>, vector<8x32xbf16>
    %c0_4 = arith.constant 0 : index
    %c0_5 = arith.constant 0 : index
    %5 = vector.load %arg4[%c0_4, %c0_5] : memref<32x64xbf16, #tpu.memory_space<vmem>>, vector<32x64xbf16>
    %cst = arith.constant dense<0.000000e+00> : vector<8x64xf32>
    %6 = tpu.matmul %4, %5, %cst {dimension_numbers = #tpu.dot_dimension_numbers<[1], [0], [0], [1], [0, 0, 1, 1], [], []>} : vector<8x32xbf16>, vector<32x64xbf16>, vector<8x64xf32> -> vector<8x64xf32>
    %7 = arith.addf %3, %6 : vector<8x64xf32>
    %c0_6 = arith.constant 0 : index
    %c0_7 = arith.constant 0 : index
    %8 = vector.load %arg6[%c0_6, %c0_7] : memref<8x64xf32, #tpu.memory_space<vmem>>, vector<8x64xf32>
    tpu.vector_store %arg6[%c0_6, %c0_7], %7 {strides = array<i32>} : memref<8x64xf32, #tpu.memory_space<vmem>>, vector<8x64xf32>,
    %c0_i32_8 = arith.constant 0 : i32
    %9 = arith.cmpi eq, %arg2, %c0_i32_8 : i32
    %10 = arith.extui %9 : i1 to i32
    %c0_i32_9 = arith.constant 0 : i32
    %11 = arith.cmpi ne, %10, %c0_i32_9 : i32
    scf.if %11 {
      %c0_10 = arith.constant 0 : index
      %c0_11 = arith.constant 0 : index
      %12 = vector.load %arg6[%c0_10, %c0_11] : memref<8x64xf32, #tpu.memory_space<vmem>>, vector<8x64xf32>
      %13 = arith.truncf %12 : vector<8x64xf32> to vector<8x64xbf16>
      %c0_12 = arith.constant 0 : index
      %c0_13 = arith.constant 0 : index
      %14 = vector.load %arg5[%c0_12, %c0_13] : memref<8x64xbf16, #tpu.memory_space<vmem>>, vector<8x64xbf16>
      tpu.vector_store %arg5[%c0_12, %c0_13], %13 {strides = array<i32>} : memref<8x64xbf16, #tpu.memory_space<vmem>>, vector<8x64xbf16>,
    } else {
    }
    return
  }
  func.func @transform_0(%arg0: i32, %arg1: i32, %arg2: i32) -> (i32, i32) {
    %c0_i32 = arith.constant 0 : i32
    return %arg0, %arg2 : i32, i32
  }
  func.func @transform_1(%arg0: i32, %arg1: i32, %arg2: i32) -> (i32, i32) {
    %c0_i32 = arith.constant 0 : i32
    return %arg2, %arg1 : i32, i32
  }
  func.func @transform_2(%arg0: i32, %arg1: i32, %arg2: i32) -> (i32, i32) {
    %c0_i32 = arith.constant 0 : i32
    return %arg0, %arg1 : i32, i32
  }
}

module attributes {stable_mosaic.version = 11 : i64} {
  func.func @_adapter_kernel(%arg0: i32, %arg1: i32, %arg2: memref<2x16x8xbf16, #tpu.memory_space<vmem>>, %arg3: memref<2x8x8xbf16, #tpu.memory_space<vmem>>, %arg4: memref<2x8x8xbf16, #tpu.memory_space<vmem>>, %arg5: memref<1x16x32xbf16, #tpu.memory_space<vmem>>, %arg6: memref<16x32xf32, #tpu.memory_space<vmem>>, %arg7: memref<16x32xf32, #tpu.memory_space<vmem>>, %arg8: memref<16x32xf32, #tpu.memory_space<vmem>>) attributes {dimension_semantics = [#tpu.dimension_semantics<parallel>, #tpu.dimension_semantics<arbitrary>], iteration_bounds = array<i64: 1, 2>, scalar_prefetch = 0 : i64, scratch_operands = 1 : i64, tpu.core_type = #tpu.core_type<tc>, window_params = [{transform_indices = @transform_0, window_bounds = array<i64: 2, 16, 8>}, {transform_indices = @transform_1, window_bounds = array<i64: 2, 8, 8>}, {transform_indices = @transform_2, window_bounds = array<i64: 2, 8, 8>}, {transform_indices = @transform_3, window_bounds = array<i64: 1, 16, 32>}, {transform_indices = @transform_4, window_bounds = array<i64: 16, 32>}, {transform_indices = @transform_5, window_bounds = array<i64: 16, 32>}]} {
    %c0_i32 = arith.constant 0 : i32
    %0 = arith.cmpi eq, %arg1, %c0_i32 : i32
    %1 = arith.extui %0 : i1 to i32
    %c0_i32_0 = arith.constant 0 : i32
    %2 = arith.cmpi ne, %1, %c0_i32_0 : i32
    scf.if %2 {
      %c0_33 = arith.constant 0 : index
      %c0_34 = arith.constant 0 : index
      %52 = vector.load %arg6[%c0_33, %c0_34] : memref<16x32xf32, #tpu.memory_space<vmem>>, vector<16x32xf32>
      %c0_35 = arith.constant 0 : index
      %c0_36 = arith.constant 0 : index
      %53 = vector.load %arg8[%c0_35, %c0_36] : memref<16x32xf32, #tpu.memory_space<vmem>>, vector<16x32xf32>
      tpu.vector_store %arg8[%c0_35, %c0_36], %52 {strides = array<i32>} : memref<16x32xf32, #tpu.memory_space<vmem>>, vector<16x32xf32>,
    } else {
    }
    %c0 = arith.constant 0 : index
    %c0_1 = arith.constant 0 : index
    %c0_2 = arith.constant 0 : index
    %3 = vector.load %arg2[%c0, %c0_1, %c0_2] : memref<2x16x8xbf16, #tpu.memory_space<vmem>>, vector<1x16x8xbf16>
    %4 = vector.shape_cast %3 : vector<1x16x8xbf16> to vector<16x8xbf16>
    %c0_3 = arith.constant 0 : index
    %c0_4 = arith.constant 0 : index
    %c0_5 = arith.constant 0 : index
    %5 = vector.load %arg3[%c0_3, %c0_4, %c0_5] : memref<2x8x8xbf16, #tpu.memory_space<vmem>>, vector<1x8x8xbf16>
    %6 = vector.shape_cast %5 : vector<1x8x8xbf16> to vector<8x8xbf16>
    %c0_6 = arith.constant 0 : index
    %c0_7 = arith.constant 0 : index
    %c0_8 = arith.constant 0 : index
    %7 = vector.load %arg4[%c0_6, %c0_7, %c0_8] : memref<2x8x8xbf16, #tpu.memory_space<vmem>>, vector<1x8x8xbf16>
    %8 = vector.shape_cast %7 : vector<1x8x8xbf16> to vector<8x8xbf16>
    %cst = arith.constant dense<0.000000e+00> : vector<16x8xf32>
    %9 = tpu.matmul %4, %6, %cst {dimension_numbers = #tpu.dot_dimension_numbers<[1], [0], [0], [1], [0, 0, 1, 1], [], []>} : vector<16x8xbf16>, vector<8x8xbf16>, vector<16x8xf32> -> vector<16x8xf32>
    %cst_9 = arith.constant dense<0xFF800000> : vector<16xf32>
    %10 = vector.multi_reduction <maximumf>, %9, %cst_9 [1] : vector<16x8xf32> to vector<16xf32>
    %11 = vector.shape_cast %10 : vector<16xf32> to vector<16x1xf32>
    %12 = vector.broadcast %11 : vector<16x1xf32> to vector<16x8xf32>
    %13 = arith.subf %9, %12 : vector<16x8xf32>
    %14 = math.exp %13 : vector<16x8xf32>
    %cst_10 = arith.constant dense<0.000000e+00> : vector<16xf32>
    %15 = vector.multi_reduction <add>, %14, %cst_10 [1] : vector<16x8xf32> to vector<16xf32>
    %16 = vector.shape_cast %15 : vector<16xf32> to vector<16x1xf32>
    %17 = tpu.reciprocal %16 {approx = true} : vector<16x1xf32> -> vector<16x1xf32>
    %18 = vector.broadcast %17 : vector<16x1xf32> to vector<16x8xf32>
    %19 = arith.mulf %14, %18 : vector<16x8xf32>
    %20 = arith.truncf %19 : vector<16x8xf32> to vector<16x8xbf16>
    %cst_11 = arith.constant dense<0.000000e+00> : vector<16x8xf32>
    %21 = tpu.matmul %20, %8, %cst_11 {dimension_numbers = #tpu.dot_dimension_numbers<[1], [0], [0], [1], [0, 0, 1, 1], [], []>} : vector<16x8xbf16>, vector<8x8xbf16>, vector<16x8xf32> -> vector<16x8xf32>
    %c1 = arith.constant 1 : index
    %c0_12 = arith.constant 0 : index
    %c0_13 = arith.constant 0 : index
    %22 = vector.load %arg2[%c1, %c0_12, %c0_13] : memref<2x16x8xbf16, #tpu.memory_space<vmem>>, vector<1x16x8xbf16>
    %23 = vector.shape_cast %22 : vector<1x16x8xbf16> to vector<16x8xbf16>
    %c1_14 = arith.constant 1 : index
    %c0_15 = arith.constant 0 : index
    %c0_16 = arith.constant 0 : index
    %24 = vector.load %arg3[%c1_14, %c0_15, %c0_16] : memref<2x8x8xbf16, #tpu.memory_space<vmem>>, vector<1x8x8xbf16>
    %25 = vector.shape_cast %24 : vector<1x8x8xbf16> to vector<8x8xbf16>
    %c1_17 = arith.constant 1 : index
    %c0_18 = arith.constant 0 : index
    %c0_19 = arith.constant 0 : index
    %26 = vector.load %arg4[%c1_17, %c0_18, %c0_19] : memref<2x8x8xbf16, #tpu.memory_space<vmem>>, vector<1x8x8xbf16>
    %27 = vector.shape_cast %26 : vector<1x8x8xbf16> to vector<8x8xbf16>
    %cst_20 = arith.constant dense<0.000000e+00> : vector<16x8xf32>
    %28 = tpu.matmul %23, %25, %cst_20 {dimension_numbers = #tpu.dot_dimension_numbers<[1], [0], [0], [1], [0, 0, 1, 1], [], []>} : vector<16x8xbf16>, vector<8x8xbf16>, vector<16x8xf32> -> vector<16x8xf32>
    %cst_21 = arith.constant dense<0xFF800000> : vector<16xf32>
    %29 = vector.multi_reduction <maximumf>, %28, %cst_21 [1] : vector<16x8xf32> to vector<16xf32>
    %30 = vector.shape_cast %29 : vector<16xf32> to vector<16x1xf32>
    %31 = vector.broadcast %30 : vector<16x1xf32> to vector<16x8xf32>
    %32 = arith.subf %28, %31 : vector<16x8xf32>
    %33 = math.exp %32 : vector<16x8xf32>
    %cst_22 = arith.constant dense<0.000000e+00> : vector<16xf32>
    %34 = vector.multi_reduction <add>, %33, %cst_22 [1] : vector<16x8xf32> to vector<16xf32>
    %35 = vector.shape_cast %34 : vector<16xf32> to vector<16x1xf32>
    %36 = tpu.reciprocal %35 {approx = true} : vector<16x1xf32> -> vector<16x1xf32>
    %37 = vector.broadcast %36 : vector<16x1xf32> to vector<16x8xf32>
    %38 = arith.mulf %33, %37 : vector<16x8xf32>
    %39 = arith.truncf %38 : vector<16x8xf32> to vector<16x8xbf16>
    %cst_23 = arith.constant dense<0.000000e+00> : vector<16x8xf32>
    %40 = tpu.matmul %39, %27, %cst_23 {dimension_numbers = #tpu.dot_dimension_numbers<[1], [0], [0], [1], [0, 0, 1, 1], [], []>} : vector<16x8xbf16>, vector<8x8xbf16>, vector<16x8xf32> -> vector<16x8xf32>
    %41 = tpu.concatenate %21, %40 in 1 : vector<16x8xf32>, vector<16x8xf32> -> vector<16x16xf32>
    %c0_24 = arith.constant 0 : index
    %c0_25 = arith.constant 0 : index
    %42 = vector.load %arg8[%c0_24, %c0_25] : memref<16x32xf32, #tpu.memory_space<vmem>>, vector<16x32xf32>
    %43 = arith.truncf %41 : vector<16x16xf32> to vector<16x16xbf16>
    %c0_26 = arith.constant 0 : index
    %c0_27 = arith.constant 0 : index
    %c0_28 = arith.constant 0 : index
    %44 = vector.load %arg5[%c0_26, %c0_27, %c0_28] : memref<1x16x32xbf16, #tpu.memory_space<vmem>>, vector<1x16x32xbf16>
    %45 = vector.shape_cast %44 : vector<1x16x32xbf16> to vector<16x32xbf16>
    %cst_29 = arith.constant dense<0.000000e+00> : vector<16x32xf32>
    %46 = tpu.matmul %43, %45, %cst_29 {dimension_numbers = #tpu.dot_dimension_numbers<[1], [0], [0], [1], [0, 0, 1, 1], [], []>} : vector<16x16xbf16>, vector<16x32xbf16>, vector<16x32xf32> -> vector<16x32xf32>
    %47 = arith.addf %42, %46 : vector<16x32xf32>
    %c0_30 = arith.constant 0 : index
    %c0_31 = arith.constant 0 : index
    %48 = vector.load %arg8[%c0_30, %c0_31] : memref<16x32xf32, #tpu.memory_space<vmem>>, vector<16x32xf32>
    tpu.vector_store %arg8[%c0_30, %c0_31], %47 {strides = array<i32>} : memref<16x32xf32, #tpu.memory_space<vmem>>, vector<16x32xf32>,
    %c1_i32 = arith.constant 1 : i32
    %49 = arith.cmpi eq, %arg1, %c1_i32 : i32
    %50 = arith.extui %49 : i1 to i32
    %c0_i32_32 = arith.constant 0 : i32
    %51 = arith.cmpi ne, %50, %c0_i32_32 : i32
    scf.if %51 {
      %c0_33 = arith.constant 0 : index
      %c0_34 = arith.constant 0 : index
      %52 = vector.load %arg8[%c0_33, %c0_34] : memref<16x32xf32, #tpu.memory_space<vmem>>, vector<16x32xf32>
      %c0_35 = arith.constant 0 : index
      %c0_36 = arith.constant 0 : index
      %53 = vector.load %arg7[%c0_35, %c0_36] : memref<16x32xf32, #tpu.memory_space<vmem>>, vector<16x32xf32>
      tpu.vector_store %arg7[%c0_35, %c0_36], %52 {strides = array<i32>} : memref<16x32xf32, #tpu.memory_space<vmem>>, vector<16x32xf32>,
    } else {
    }
    return
  }
  func.func @transform_0(%arg0: i32, %arg1: i32) -> (i32, i32, i32) {
    %c0_i32 = arith.constant 0 : i32
    %c0_i32_0 = arith.constant 0 : i32
    return %arg1, %arg0, %c0_i32 : i32, i32, i32
  }
  func.func @transform_1(%arg0: i32, %arg1: i32) -> (i32, i32, i32) {
    %c0_i32 = arith.constant 0 : i32
    %c0_i32_0 = arith.constant 0 : i32
    %c0_i32_1 = arith.constant 0 : i32
    return %arg1, %c0_i32, %c0_i32_0 : i32, i32, i32
  }
  func.func @transform_2(%arg0: i32, %arg1: i32) -> (i32, i32, i32) {
    %c0_i32 = arith.constant 0 : i32
    %c0_i32_0 = arith.constant 0 : i32
    %c0_i32_1 = arith.constant 0 : i32
    return %arg1, %c0_i32, %c0_i32_0 : i32, i32, i32
  }
  func.func @transform_3(%arg0: i32, %arg1: i32) -> (i32, i32, i32) {
    %c0_i32 = arith.constant 0 : i32
    %c0_i32_0 = arith.constant 0 : i32
    %c0_i32_1 = arith.constant 0 : i32
    return %arg1, %c0_i32, %c0_i32_0 : i32, i32, i32
  }
  func.func @transform_4(%arg0: i32, %arg1: i32) -> (i32, i32) {
    %c0_i32 = arith.constant 0 : i32
    %c0_i32_0 = arith.constant 0 : i32
    return %arg0, %c0_i32 : i32, i32
  }
  func.func @transform_5(%arg0: i32, %arg1: i32) -> (i32, i32) {
    %c0_i32 = arith.constant 0 : i32
    %c0_i32_0 = arith.constant 0 : i32
    return %arg0, %c0_i32 : i32, i32
  }
}

</mosaic_0001>

<bundles_post_ra>
// kernel: adapted_attention_forward.2
= control target key start
LH: loop header
LB: loop body
LE: loop exit
PB: predicated region body
PF: predicated region fallthrough
CT: control target
= control target key end

     0   :  { %vm16_vm0 = vcmask 523264   ;;  %v112_v0 = vmov 0.0   ;;  %vm113_vm1 = vmmov 0   ;;  %vm36_vm2 = vcmask 261120   ;;  %s143_s1 = inlined_call_operand.vmem [shape: bf16[32,64], index: 1, kind: input, shape index: {}]   ;;  %s144_s0 = inlined_call_operand.vmem [shape: bf16[8,32], index: 0, kind: input, shape index: {}]   ;;  %s145_s2 = inlined_call_operand.vmem [shape: bf16[8,64], index: 2, kind: output, shape index: {}]  }
   0x1   :  { %17 = vst.msk [vmem:[#allocation2] sm:$0xff] %vm16_vm0, %v112_v0  ;;  %100 = vmatprep.subr.bf16.mxu0 %v112_v0  ;;  %v110_v1 = vld [vmem:[%s143_s1 + $0x8] sm:$0xff]   ;;  %104 = vmatprep.mubr.msk.bf16.mxu0 %vm113_vm1, %v112_v0  ;;  %v111_v2 = vld [vmem:[%s143_s1] sm:$0xff]   ;;  %vm88_vm3 = vcmask 519168  }
   0x2   :  { %101 = vmatpush3.bf16.msra.mxu0 %v110_v1  ;;  %v19_v3 = vld [vmem:[%s144_s0] sm:$0xf] }
   0x3   :  { %102 = vmatprep.subr.bf16.mxu0 %v112_v0 }
   0x6   :  { %103 = vmatpush3.bf16.msra.mxu0 %v111_v2 }
   0x8   :  { %v18_v4 = vld [vmem:[#allocation2] sm:$0xff] }
   0x9   :  { %105 = vmatmul.mubr.msk.bf16.vlgmr.msra.gmra.mxu0 %vm36_vm2, %v19_v3 }
  0xc9   :  { %v74_v5 = vpop.f32.mrf.mxu0 }
  0xca   :  { %v80_v6 = vadd.f32 %v74_v5, %v18_v4 }
  0xcb   :  { %v106_v7 = vpop.f32.mrf.mxu0 }
  0xcc   :  { %82 = vst.msk [vmem:[#allocation2] sm:$0xff] %vm16_vm0, %v80_v6 }
  0xcd   :  { %v77_v8 = vpop.f32.mrf.mxu0 }
  0xcf   :  { %v107_v9 = vpop.f32.mrf.mxu0 }
  0xd3   :  { %v86_v10 = vld [vmem:[#allocation2] sm:$0xff] }
  0xd4   :  { %v87_v11 = vpack.c.bf16 %v86_v10, %v86_v10 }
  0xd6   :  { %89 = vst.msk [vmem:[%s145_s2] sm:$0xf] %vm88_vm3, %v87_v11 }

// kernel: adapted_attention_forward.3
= control target key start
LH: loop header
LB: loop body
LE: loop exit
PB: predicated region body
PF: predicated region fallthrough
CT: control target
= control target key end

     0   :  { %s992_s18 = smov 0   ;;  %s994_s19 = smov 0   ;;  %s1094_s0 = inlined_call_operand.vmem [shape: bf16[4,16,8], index: 0, kind: input, shape index: {}]   ;;  %s1095_s1 = inlined_call_operand.vmem [shape: bf16[4,8,8], index: 1, kind: input, shape index: {}]   ;;  %s1096_s2 = inlined_call_operand.vmem [shape: bf16[4,8,8], index: 2, kind: input, shape index: {}]   ;;  %s1097_s3 = inlined_call_operand.vmem [shape: bf16[2,16,32], index: 3, kind: input, shape index: {}]   ;;  %s1098_s4 = inlined_call_operand.vmem [shape: f32[16,32], index: 4, kind: input, shape index: {}, may-alias: {4,5}]   ;;  %s1099_s5 = inlined_call_operand.vmem [shape: f32[16,32], index: 5, kind: output, shape index: {}, may-alias: {4,5}]  }
   0x1   :  { %s996_s20 = smov 0  }
   0x2 LB: > { %s24_s21 = sadd.s32 1, %s953_s19  ;;  %p814_p0 = scmp.ge.s32.totalorder %s957_s20, 1  ;;  %s957_s20 = sphi %s996_s20, %s15_s20   ;;  %s953_s19 = sphi %s994_s19, %s1101_s19   ;;  %s949_s18 = sphi %s992_s18, %s1100_s18  }
   0x3   : > { %p25_p1 = scmp.ge.s32.totalorder %s24_s21, 2  ;;  %p251_p2 = scmp.lt.s32.totalorder %s957_s20, 3 }
   0x5   : > { %s1103_s21 = smov (%p25_p1, %s24_s21), 0  ;;  %p252_p3 = pnand %p814_p0, %p251_p2 }
   0x6   : > { %s815_s22 = sshll.u32 (!%p252_p3), %s949_s18, 1  ;;  %p328_p4 = scmp.lt.s32.totalorder (!%p252_p3), %s949_s18, 1 }
   0x7   : > { %255 = sbr.rel (%p252_p3) target bundleno = 1071 (0x42f), region = 40  ;;  %p306_p5 = scmp.lt.s32.totalorder (!%p252_p3), %s815_s22, 3 }
   0x8   : > { %p824_p6 = scmp.ne.s32.totalorder (!%p252_p3), %s949_s18, 0 }
   0xc   : > { %s329_s23 = scalar_select %p328_p4, %s949_s18, 1 }
   0xd   : > { %s1105_s22 = smov (!%p306_p5, %s815_s22), 3  ;;  %349 = sbr.rel (%p824_p6) target bundleno = 20 (0x14), region = 44 }
   0xe   : > { %s843_s24 = sshll.u32 %s329_s23, 3  ;;  %s842_s25 = sshll.u32 %s1105_s22, 3 }
   0xf   : > { %s819_s26 = sshll.u32 %s1105_s22, 2  ;;  %s1018_s29 = scalar_lea.vmem %s1094_s0, %s842_s25 }
  0x10   : > { %s320_s7 = scalar_lea.vmem %s1095_s1, %s819_s26  ;;  %s1026_s10 = scalar_lea.vmem %s1096_s2, %s819_s26 }
  0x11   : > { %s1031_s13 = scalar_lea.vmem %s1097_s3, %s843_s24 }
  0x12   : > { %v350_v0 = vld [vmem:[%s1098_s4] sm:$0xff]  ;;  %vm352_vm0 = vcmask 261120   ;;  %v351_v1 = vld [vmem:[%s1098_s4 + $0x8] sm:$0xff] }
  0x13   : > { %353 = vst.msk [vmem:[#allocation2] sm:$0xff] %vm352_vm0, %v350_v0  ;;  %354 = vst.msk [vmem:[#allocation2 + $0x8] sm:$0xff] %vm352_vm0, %v351_v1 }
  0x14 PF: > { %v357_v2 = vld [vmem:[%s320_s7] sm:$0xf]  ;;  %vm368_vm1 = vcmask 1043456   ;;  %v959_v4 = vmov 0.0   ;;  %vm960_vm2 = vmmov 0   ;;  %vm364_vm3 = vcmask 64512  }
  0x15   : > { %v916_v3 = vld [vmem:[%s1018_s29] sm:$0xff]   ;;  %854 = vmatprep.subr.bf16.mxu0 %v959_v4  ;;  %v370_v5 = vsel %vm368_vm1, %v357_v2, 0  ;;  %856 = vmatprep.mubr.msk.bf16.mxu0 %vm960_vm2, %v959_v4  ;;  %v917_v8 = vld [vmem:[%s1018_s29 + $0x8] sm:$0xff]   ;;  %s961_s22 = smov 8   ;;  %vm633_vm4 = vcmask 130048   ;;  %vm680_vm5 = vcmask 261120  }
  0x16   : > { %855 = vmatpush3.bf16.msra.mxu0 %v370_v5  ;;  %v830_v6 = vld [vmem:[%s320_s7 + $0x4] sm:$0xf]  ;;  %860 = vmatprep.subr.bf16.mxu1 %v959_v4  ;;  %v358_v41 = vld [vmem:[%s1026_s10] sm:$0xf]  ;;  %p837_p7 = scmp.ne.s32.totalorder %s949_s18, 1 }
  0x17   : > { %866 = vmatprep.subr.bf16.mxu0 %v959_v4  ;;  %v499_v7 = vsel %vm368_vm1, %v830_v6, 0  ;;  %862 = vmatprep.mubr.msk.bf16.mxu1 %vm960_vm2, %v959_v4  ;;  %v440_v42 = vsel %vm368_vm1, %v358_v41, 0  ;;  %v831_v49 = vld [vmem:[%s1026_s10 + $0x4] sm:$0xf] }
  0x18   : > { %861 = vmatpush3.bf16.msra.mxu1 %v440_v42  ;;  %v569_v53 = vsel %vm368_vm1, %v831_v49, 0  ;;  %v918_v59 = vld [vmem:[%s1031_s13] sm:$0xff]  }
  0x19   : > { %857 = vmatmul.mubr.msk.bf16.vlgmr.msra.gmra.mxu0 %vm364_vm3, %v916_v3  ;;  %872 = vmatprep.subr.bf16.mxu1 %v959_v4 }
  0x1a   : > { %867 = vmatpush3.bf16.msra.mxu0 %v499_v7  ;;  %868 = vmatprep.mubr.msk.bf16.mxu0 %vm960_vm2, %v959_v4 }
  0x1b   : > { %878 = vmatprep.subr.bf16.mxu0 %v959_v4 }
  0x21   : > { %869 = vmatmul.mubr.msk.bf16.vlgmr.msra.gmra.mxu0 %vm364_vm3, %v917_v8 }
  0x22   : > { %880 = vmatprep.mubr.msk.bf16.mxu0 %vm960_vm2, %v959_v4  ;;  %879 = vmatpush3.bf16.msra.mxu0 %v918_v59 }
  0xd9   : > { %v406_v9 = vpop.f32.mrf.mxu0 }
  0xda   : > { %v413_v10 = vsel %vm364_vm3, %v406_v9, -inf }
  0xdb   : > { %414 = vmax.xlane.f32.xlu0 %v413_v10  ;;  %v858_v11 = vpop.f32.mrf.mxu0 }
  0xdc   : > { %v622_v11 = vld [vmem:[#allocation2] sm:$0xff] }
  0xdd   : > { %v409_v12 = vpop.f32.mrf.mxu0 }
  0xde   : > { %v416_v13 = vsel %vm364_vm3, %v409_v12, -inf }
  0xdf   : > { %417 = vmax.xlane.f32.xlu0 %v416_v13  ;;  %v859_v14 = vpop.f32.mrf.mxu0 }
  0xe1   : > { %v535_v15 = vpop.f32.mrf.mxu0 }
  0xe2   : > { %v542_v16 = vsel %vm364_vm3, %v535_v15, -inf }
  0xe3   : > { %543 = vmax.xlane.f32.xlu1 %v542_v16  ;;  %v870_v17 = vpop.f32.mrf.mxu0 }
  0xe5   : > { %v538_v18 = vpop.f32.mrf.mxu0 }
  0xe6   : > { %v545_v19 = vsel %vm364_vm3, %v538_v18, -inf }
  0xe7   : > { %546 = vmax.xlane.f32.xlu1 %v545_v19  ;;  %v871_v20 = vpop.f32.mrf.mxu0 }
 0x164   : > { %v415_v21 = vpop.xlane.xlu0 %414 }
 0x165   : > { %v419_v22 = vsub.f32 %v406_v9, %v415_v21 }
 0x167   : > { %v421_v23 = vmul.f32 1.442695, %v419_v22 }
 0x168   : > { %v418_v24 = vpop.xlane.xlu0 %417 }
 0x169   : > { %919 = vpow2.f32 %v421_v23  ;;  %v420_v25 = vsub.f32 %v409_v12, %v418_v24 }
 0x16b   : > { %v423_v26 = vmul.f32 1.442695, %v420_v25 }
 0x16c   : > { %v544_v27 = vpop.xlane.xlu1 %543 }
 0x16d   : > { %921 = vpow2.f32 %v423_v26  ;;  %v548_v28 = vsub.f32 %v535_v15, %v544_v27  ;;  %v623_v15 = vld [vmem:[#allocation2 + $0x8] sm:$0xff] }
 0x16f   : > { %v550_v29 = vmul.f32 1.442695, %v548_v28 }
 0x170   : > { %v547_v30 = vpop.xlane.xlu1 %546 }
 0x171   : > { %923 = vpow2.f32 %v550_v29  ;;  %v549_v31 = vsub.f32 %v538_v18, %v547_v30 }
 0x173   : > { %v552_v32 = vmul.f32 1.442695, %v549_v31 }
 0x175   : > { %925 = vpow2.f32 %v552_v32 }
 0x176   : > { %v920_v33 = vpop.eup %919 }
 0x177   : > { %v425_v34 = vsel %vm364_vm3, %v920_v33, 0.0 }
 0x178   : > { %426 = vadd.xlane.f32.xlu0 %v425_v34 }
 0x17a   : > { %v922_v35 = vpop.eup %921 }
 0x17b   : > { %v428_v36 = vsel %vm364_vm3, %v922_v35, 0.0 }
 0x17c   : > { %429 = vadd.xlane.f32.xlu1 %v428_v36 }
 0x17e   : > { %v924_v37 = vpop.eup %923 }
 0x17f   : > { %v554_v38 = vsel %vm364_vm3, %v924_v37, 0.0 }
 0x180   : > { %555 = vadd.xlane.f32.xlu0 %v554_v38 }
 0x182   : > { %v926_v39 = vpop.eup %925 }
 0x183   : > { %v557_v40 = vsel %vm364_vm3, %v926_v39, 0.0 }
 0x184   : > { %558 = vadd.xlane.f32.xlu1 %v557_v40 }
 0x201   : > { %v427_v43 = vpop.xlane.xlu0 %426 }
 0x202   : > { %927 = vrcp.f32 %v427_v43 }
 0x205   : > { %v430_v44 = vpop.xlane.xlu1 %429 }
 0x206   : > { %929 = vrcp.f32 %v430_v44 }
 0x209   : > { %v556_v45 = vpop.xlane.xlu0 %555 }
 0x20a   : > { %931 = vrcp.f32 %v556_v45 }
 0x20d   : > { %v559_v46 = vpop.xlane.xlu1 %558 }
 0x20e   : > { %933 = vrcp.f32 %v559_v46 }
 0x20f   : > { %v928_v47 = vpop.eup %927 }
 0x210   : > { %v433_v50 = vmul.f32 %v928_v47, %v920_v33 }
 0x213   : > { %v930_v48 = vpop.eup %929 }
 0x214   : > { %v434_v51 = vmul.f32 %v930_v48, %v922_v35 }
 0x216   : > { %v435_v52 = vpack.c.bf16 %v434_v51, %v433_v50 }
 0x217   : > { %v932_v54 = vpop.eup %931 }
 0x218   : > { %863 = vmatmul.mubr.msk.bf16.vlgmr.msra.gmra.mxu1 %vm364_vm3, %v435_v52  ;;  %v562_v57 = vmul.f32 %v932_v54, %v924_v37 }
 0x219   : > { %873 = vmatpush3.bf16.msra.mxu1 %v569_v53  ;;  %874 = vmatprep.mubr.msk.bf16.mxu1 %vm960_vm2, %v959_v4 }
 0x21b   : > { %v934_v55 = vpop.eup %933 }
 0x21c   : > { %v563_v56 = vmul.f32 %v934_v55, %v926_v39 }
 0x21e   : > { %v564_v58 = vpack.c.bf16 %v563_v56, %v562_v57 }
 0x220   : > { %875 = vmatmul.mubr.msk.bf16.vlgmr.msra.gmra.mxu1 %vm364_vm3, %v564_v58 }
 0x2d8   : > { %v476_v60 = vpop.f32.mrf.mxu1 }
 0x2da   : > { %v864_v61 = vpop.f32.mrf.mxu1 }
 0x2dc   : > { %v479_v62 = vpop.f32.mrf.mxu1 }
 0x2de   : > { %v865_v63 = vpop.f32.mrf.mxu1 }
 0x2e0   : > { %v605_v0 = vpop.f32.mrf.mxu1 }
 0x2e2   : > { %v876_v1 = vpop.f32.mrf.mxu1 }
 0x2e4   : > { %v608_v2 = vpop.f32.mrf.mxu1 }
 0x2e5   : > { %v911_v3 = vpack.i.bf16 %v608_v2, %v605_v0 }
 0x2e6   : > { %v877_v5 = vpop.f32.mrf.mxu1 }
 0x2e7   : > { %912 = vrot.lane.b32.xlu0 %v911_v3, %s961_s22 }
 0x359   : > { %v913_v4 = vpop.permute.xlu0 %912 }
 0x35a   : > { %v915_v6 = vunpack.i.h.bf16 %v913_v4  ;;  %v914_v7 = vunpack.i.l.bf16 %v913_v4 }
 0x35c   : > { %v621_v8 = vsel %vm364_vm3, %v479_v62, %v915_v6  ;;  %v620_v9 = vsel %vm364_vm3, %v476_v60, %v914_v7 }
 0x35d   : > { %v624_v10 = vpack.c.bf16 %v621_v8, %v620_v9 }
 0x35f   : > { %881 = vmatmul.mubr.msk.bf16.vlgmr.msra.gmra.mxu0 %vm633_vm4, %v624_v10 }
 0x41f   : > { %v671_v12 = vpop.f32.mrf.mxu0 }
 0x420   : > { %v678_v13 = vadd.f32 %v671_v12, %v622_v11 }
 0x421   : > { %v882_v14 = vpop.f32.mrf.mxu0 }
 0x422   : > { %681 = vst.msk [vmem:[#allocation2] sm:$0xff] %vm680_vm5, %v678_v13  ;;  %686 = sbr.rel (%p837_p7) target bundleno = 1071 (0x42f), region = 48 }
 0x423   : > { %v674_v16 = vpop.f32.mrf.mxu0 }
 0x424   : > { %v679_v17 = vadd.f32 %v674_v16, %v623_v15 }
 0x425   : > { %v883_v18 = vpop.f32.mrf.mxu0 }
 0x426   : > { %682 = vst.msk [vmem:[#allocation2 + $0x8] sm:$0xff] %vm680_vm5, %v679_v17 }
 0x429   : > { %v687_v19 = vld [vmem:[#allocation2] sm:$0xff] }
 0x42a   : > { %689 = vst.msk [vmem:[%s1099_s5] sm:$0xff] %vm680_vm5, %v687_v19 }
 0x42d   : > { %v688_v20 = vld [vmem:[#allocation2 + $0x8] sm:$0xff] }
 0x42e   : > { %690 = vst.msk [vmem:[%s1099_s5 + $0x8] sm:$0xff] %vm680_vm5, %v688_v20 }
 0x42f PF: > { %s15_s20 = sadd.s32 1, %s957_s20   ;;  %s1100_s18 = smov %s953_s19 }
 0x430   : > { %p12_p8 = scmp.ge.s32.totalorder %s15_s20, 4   ;;  %s1101_s19 = smov %s1103_s21 }
 0x432   :  { %14 = sbr.rel (!%p12_p8) target bundleno = 2 (0x2), region = 93 }

</bundles_post_ra>
